<compile_context>
chip_gen: v7x
topology: tpu7x:2x2x1
jax: 0.10.0
libtpu: 0.0.40
codegen_flags: <defaults>
</compile_context>

<pallas_src>
import functools

import jax
import jax.numpy as jnp
from jax.experimental import pallas as pl
from jax.experimental.pallas import tpu as pltpu

LANE = 128
SUBLANE = 8


def _rmse_kernel(x_ref, y_ref, o_ref, acc_ref, *, total_elems):
    i = pl.program_id(0)

    @pl.when(i == 0)
    def _():
        acc_ref[...] = jnp.zeros_like(acc_ref)

    # Squared difference in f32 on the VPU (inputs may be bf16/f32).
    d = x_ref[...].astype(jnp.float32) - y_ref[...].astype(jnp.float32)
    sq = d * d

    # Fold the (tile_rows, 128) tile down to an (8, 128) lane-resident partial
    # sum: pure vreg adds (VPU), no per-step XLU cross-lane reduce and no SMEM
    # round-trip.  tile_rows is a multiple of 8 by construction.
    tile_rows = sq.shape[0]
    acc_ref[...] += jnp.sum(
        sq.reshape(tile_rows // SUBLANE, SUBLANE, LANE), axis=0
    )

    # Exactly one cross-lane reduce + sqrt, at the last grid step.
    @pl.when(i == pl.num_programs(0) - 1)
    def _():
        o_ref[0, 0] = jnp.sqrt(jnp.sum(acc_ref[...]) / jnp.float32(total_elems))


def rmse_loss(x, y, *, tile_rows=1024):
    assert x.shape == y.shape, "x and y must have the same shape"
    total = x.size
    assert total > 0

    # Flatten; order does not matter for a full-mean reduction.
    xf = x.reshape(-1)
    yf = y.reshape(-1)

    # Rows of the lane-dense (rows, 128) slab.
    rows = pl.cdiv(total, LANE)

    # Clamp the tile to the problem size, keep it a multiple of 8 sublanes.
    tile_rows = max(SUBLANE, min(tile_rows, pl.cdiv(rows, SUBLANE) * SUBLANE))
    tile_rows = (tile_rows // SUBLANE) * SUBLANE
    rows_padded = pl.cdiv(rows, tile_rows) * tile_rows

    padded_len = rows_padded * LANE
    pad = padded_len - total
    if pad:
        # Identical (zero) padding on both inputs -> padded squared diff is 0;
        # the divisor in the kernel stays the true element count.
        xf = jnp.pad(xf, (0, pad))
        yf = jnp.pad(yf, (0, pad))

    x2 = xf.reshape(rows_padded, LANE)
    y2 = yf.reshape(rows_padded, LANE)
    grid = (rows_padded // tile_rows,)

    kernel = functools.partial(_rmse_kernel, total_elems=total)

    itemsize = jnp.dtype(x.dtype).itemsize
    cost = pl.CostEstimate(
        flops=3 * total,
        transcendentals=1,
        bytes_accessed=2 * padded_len * itemsize + 4,
    )

    out = pl.pallas_call(
        kernel,
        out_shape=jax.ShapeDtypeStruct((1, 1), jnp.float32),
        grid_spec=pltpu.PrefetchScalarGridSpec(
            num_scalar_prefetch=0,
            grid=grid,
            in_specs=[
                pl.BlockSpec((tile_rows, LANE), lambda i: (i, 0)),
                pl.BlockSpec((tile_rows, LANE), lambda i: (i, 0)),
            ],
            out_specs=pl.BlockSpec(memory_space=pltpu.MemorySpace.SMEM),
            scratch_shapes=[pltpu.VMEM((SUBLANE, LANE), jnp.float32)],
        ),
        compiler_params=pltpu.CompilerParams(
            dimension_semantics=("arbitrary",)
        ),
        cost_estimate=cost,
    )(x2, y2)
    return out[0, 0]

    # TODO(synk): optionally split rows across the 2 TensorCores on v7x via a
    # leading "parallel" grid axis and combine per-core partials in the wrapper.


if __name__ == "__main__":
    key = jax.random.PRNGKey(0)
    kx, ky = jax.random.split(key)
    # NCHW inputs, as a PyTorch model would produce: batch=2, channels=4, 16x16
    x = jax.random.normal(kx, (2, 4, 16, 16), dtype=jnp.float32)
    y = jax.random.normal(ky, (2, 4, 16, 16), dtype=jnp.float32)

    out = jax.block_until_ready(rmse_loss(x, y))

    # Reference check in plain JAX.
    ref = jnp.sqrt(jnp.mean((x - y) ** 2))
    assert jnp.allclose(out, ref, rtol=1e-5, atol=1e-6), (out, ref)

    # Also check a shape that needs padding (not a multiple of 128).
    xs = jax.random.normal(kx, (3, 5, 7), dtype=jnp.float32)
    ys = jax.random.normal(ky, (3, 5, 7), dtype=jnp.float32)
    out2 = jax.block_until_ready(rmse_loss(xs, ys))
    ref2 = jnp.sqrt(jnp.mean((xs - ys) ** 2))
    assert jnp.allclose(out2, ref2, rtol=1e-5, atol=1e-6), (out2, ref2)

    print("KERNEL_OK")
</pallas_src>

<mosaic_0001>
module attributes {stable_mosaic.version = 11 : i64} {
  func.func @_rmse_kernel(%arg0: i32, %arg1: memref<16x128xf32, #tpu.memory_space<vmem>>, %arg2: memref<16x128xf32, #tpu.memory_space<vmem>>, %arg3: memref<1x1xf32, #tpu.memory_space<smem>>, %arg4: memref<8x128xf32, #tpu.memory_space<vmem>>) attributes {dimension_semantics = [#tpu.dimension_semantics<arbitrary>], iteration_bounds = array<i64: 1>, scalar_prefetch = 0 : i64, scratch_operands = 1 : i64, tpu.core_type = #tpu.core_type<tc>, window_params = [{transform_indices = @transform_0, window_bounds = array<i64: 16, 128>}, {transform_indices = @transform_1, window_bounds = array<i64: 16, 128>}, {transform_indices = @transform_2, window_bounds = array<i64: 1, 1>}]} {
    %c0_i32 = arith.constant 0 : i32
    %0 = arith.cmpi eq, %arg0, %c0_i32 : i32
    %1 = arith.extui %0 : i1 to i32
    %c0_i32_0 = arith.constant 0 : i32
    %2 = arith.cmpi ne, %1, %c0_i32_0 : i32
    scf.if %2 {
      %cst_10 = arith.constant 0.000000e+00 : f32
      %15 = vector.broadcast %cst_10 : f32 to vector<8x128xf32>
      %c0_11 = arith.constant 0 : index
      %c0_12 = arith.constant 0 : index
      %16 = vector.load %arg4[%c0_11, %c0_12] : memref<8x128xf32, #tpu.memory_space<vmem>>, vector<8x128xf32>
      tpu.vector_store %arg4[%c0_11, %c0_12], %15 {strides = array<i32>} : memref<8x128xf32, #tpu.memory_space<vmem>>, vector<8x128xf32>,
    } else {
    }
    %c0 = arith.constant 0 : index
    %c0_1 = arith.constant 0 : index
    %3 = vector.load %arg1[%c0, %c0_1] : memref<16x128xf32, #tpu.memory_space<vmem>>, vector<16x128xf32>
    %c0_2 = arith.constant 0 : index
    %c0_3 = arith.constant 0 : index
    %4 = vector.load %arg2[%c0_2, %c0_3] : memref<16x128xf32, #tpu.memory_space<vmem>>, vector<16x128xf32>
    %5 = arith.subf %3, %4 : vector<16x128xf32>
    %6 = arith.mulf %5, %5 : vector<16x128xf32>
    %c0_4 = arith.constant 0 : index
    %c0_5 = arith.constant 0 : index
    %7 = vector.load %arg4[%c0_4, %c0_5] : memref<8x128xf32, #tpu.memory_space<vmem>>, vector<8x128xf32>
    %8 = vector.shape_cast %6 : vector<16x128xf32> to vector<2x8x128xf32>
    %cst = arith.constant dense<0.000000e+00> : vector<8x128xf32>
    %9 = vector.multi_reduction <add>, %8, %cst [0] : vector<2x8x128xf32> to vector<8x128xf32>
    %10 = arith.addf %7, %9 : vector<8x128xf32>
    %c0_6 = arith.constant 0 : index
    %c0_7 = arith.constant 0 : index
    %11 = vector.load %arg4[%c0_6, %c0_7] : memref<8x128xf32, #tpu.memory_space<vmem>>, vector<8x128xf32>
    tpu.vector_store %arg4[%c0_6, %c0_7], %10 {strides = array<i32>} : memref<8x128xf32, #tpu.memory_space<vmem>>, vector<8x128xf32>,
    %c0_i32_8 = arith.constant 0 : i32
    %12 = arith.cmpi eq, %arg0, %c0_i32_8 : i32
    %13 = arith.extui %12 : i1 to i32
    %c0_i32_9 = arith.constant 0 : i32
    %14 = arith.cmpi ne, %13, %c0_i32_9 : i32
    scf.if %14 {
      %c0_10 = arith.constant 0 : index
      %c0_11 = arith.constant 0 : index
      %15 = vector.load %arg4[%c0_10, %c0_11] : memref<8x128xf32, #tpu.memory_space<vmem>>, vector<8x128xf32>
      %16 = vector.shape_cast %15 : vector<8x128xf32> to vector<1x8x128xf32>
      %cst_12 = arith.constant dense<0.000000e+00> : vector<1xf32>
      %17 = vector.multi_reduction <add>, %16, %cst_12 [1, 2] : vector<1x8x128xf32> to vector<1xf32>
      %18 = vector.shape_cast %17 : vector<1xf32> to vector<1x1x1xf32>
      %19 = vector.extract %18[0, 0, 0] : f32 from vector<1x1x1xf32>
      %cst_13 = arith.constant 2.048000e+03 : f32
      %20 = arith.divf %19, %cst_13 : f32
      %21 = math.sqrt %20 : f32
      %c0_14 = arith.constant 0 : index
      %c0_15 = arith.constant 0 : index
      %22 = memref.load %arg3[%c0_14, %c0_15] : memref<1x1xf32, #tpu.memory_space<smem>>
      memref.store %21, %arg3[%c0_14, %c0_15] : memref<1x1xf32, #tpu.memory_space<smem>>
    } else {
    }
    return
  }
  func.func @transform_0(%arg0: i32) -> (i32, i32) {
    %c0_i32 = arith.constant 0 : i32
    %c0_i32_0 = arith.constant 0 : i32
    return %arg0, %c0_i32 : i32, i32
  }
  func.func @transform_1(%arg0: i32) -> (i32, i32) {
    %c0_i32 = arith.constant 0 : i32
    %c0_i32_0 = arith.constant 0 : i32
    return %arg0, %c0_i32 : i32, i32
  }
  func.func @transform_2(%arg0: i32) -> (i32, i32) {
    %c0_i32 = arith.constant 0 : i32
    %c0_i32_0 = arith.constant 0 : i32
    %c0_i32_1 = arith.constant 0 : i32
    return %c0_i32, %c0_i32_0 : i32, i32
  }
}

</mosaic_0001>

<bundles_post_ra>
// kernel: tpu_custom_call.1
= control target key start
LH: loop header
LB: loop body
LE: loop exit
PB: predicated region body
PF: predicated region fallthrough
CT: control target
= control target key end

     0   :  { %7 = vsyncpa [#allocation4], 0  ;;  %s226_s0 = inlined_call_operand.hbm [shape: f32[16,128], index: 0, kind: input, shape index: {}]   ;;  %s227_s1 = inlined_call_operand.hbm [shape: f32[16,128], index: 1, kind: input, shape index: {}]   ;;  %s228_s2 = inlined_call_operand.hbm [shape: f32[1,1], index: 2, kind: output, shape index: {}]  }
   0x1   :  { %8 = vsyncpa [#allocation7], 0 }
   0x2   :  { %9 = vsyncpa [#allocation5], 0  ;;  %s170_s9 = smov [#allocation3]   ;;  %s110_s13 = scalar_lea.hbm %s226_s0, 256 }
   0x3   :  { %s15_s10 = sshll.u32 %s170_s9, 4  ;;  %p111_p0 = scmp.ne.s32.totalorder %s226_s0, %s110_s13  ;;  %s16_s10 = int_to_ptr.vmem [resolvable:$true] %s15_s10 }
   0x4   :  { %p114_p1 = scmp.lt.u32.totalorder %s110_s13, %s226_s0 }
   0x6   :  { %p116_p2 = pnand %p114_p1, %p111_p0 }
   0x8   :  { %119 = shalt.err (!%p116_p2)
}
   0x9   :  { %s120_s18 = scalar_lea.vmem %s16_s10, 256  ;;  %p125_p4 = scmp.lt.s32.totalorder %s16_s10, %s16_s10 }
   0xa   :  { %p121_p3 = scmp.ne.s32.totalorder %s16_s10, %s120_s18  ;;  %p126_p5 = scmp.lt.s32.totalorder %s120_s18, %s120_s18 }
   0xc   :  { %p127_p6 = por %p126_p5, %p125_p4 }
   0xe   :  { %p128_p7 = pnand %p127_p6, %p121_p3 }
  0x10   :  { %131 = shalt.err (!%p128_p7)
}
  0x11   :  { %s171_s19 = smov 128   ;;  %s172_s20 = smov 8  }
  0x12   :  { %21 = dma.hbm_to_vmem [thread:$0]  %s226_s0, 256, %s16_s10, [#allocation4], %s171_s19, %s171_s19, %s172_s20  }
  0x13   :  { %s173_s23 = smov [#allocation6]   ;;  %s132_s27 = scalar_lea.hbm %s227_s1, 256 }
  0x14   :  { %s27_s24 = sshll.u32 %s173_s23, 4  ;;  %p133_p8 = scmp.ne.s32.totalorder %s227_s1, %s132_s27  ;;  %s28_s24 = int_to_ptr.vmem [resolvable:$true] %s27_s24 }
  0x15   :  { %p136_p9 = scmp.lt.u32.totalorder %s132_s27, %s227_s1 }
  0x17   :  { %p138_p10 = pnand %p136_p9, %p133_p8 }
  0x19   :  { %141 = shalt.err (!%p138_p10)
}
  0x1a   :  { %s142_s4 = scalar_lea.vmem %s28_s24, 256  ;;  %p147_p12 = scmp.lt.s32.totalorder %s28_s24, %s28_s24 }
  0x1b   :  { %p143_p11 = scmp.ne.s32.totalorder %s28_s24, %s142_s4  ;;  %p148_p13 = scmp.lt.s32.totalorder %s142_s4, %s142_s4 }
  0x1d   :  { %p149_p0 = por %p148_p13, %p147_p12 }
  0x1f   :  { %p150_p1 = pnand %p149_p0, %p143_p11 }
  0x21   :  { %153 = shalt.err (!%p150_p1)
}
  0x22   :  { %33 = dma.hbm_to_vmem [thread:$0]  %s227_s1, 256, %s28_s24, [#allocation7], %s171_s19, %s171_s19, %s172_s20  }
  0x23   :  { %164 = dma.done.wait [#allocation4], 256  }
  0x24   :  { %165 = vsyncadd [#allocation4], 4294967040 }
  0x25   :  { %166 = dma.done.wait [#allocation7], 256  }
  0x26   :  { %167 = vsyncadd [#allocation7], 4294967040  ;;  %v45_v0 = vld [vmem:[#allocation3] sm:$0xff]  ;;  %v46_v1 = vld [vmem:[#allocation3 + $0x8] sm:$0xff]  ;;  %s154_s10 = scalar_lea.hbm %s228_s2, 16 }
  0x27   :  { %v47_v2 = vld [vmem:[#allocation6] sm:$0xff]  ;;  %v48_v3 = vld [vmem:[#allocation6 + $0x8] sm:$0xff]  ;;  %p155_p2 = scmp.ne.s32.totalorder %s228_s2, %s154_s10  ;;  %p158_p3 = scmp.lt.u32.totalorder %s154_s10, %s228_s2 }
  0x28   :  { %v49_v4 = vsub.f32 %v45_v0, %v47_v2  ;;  %v50_v5 = vsub.f32 %v46_v1, %v48_v3 }
  0x29   :  { %p160_p4 = pnand %p158_p3, %p155_p2 }
  0x2a   :  { %v51_v6 = vmul.f32 %v49_v4, %v49_v4  ;;  %v52_v7 = vmul.f32 %v50_v5, %v50_v5 }
  0x2c   :  { %v54_v8 = vadd.f32 %v52_v7, %v51_v6 }
  0x2e   :  { %61 = vadd.xlane.f32.xlu0 %v54_v8 }
  0xbb   :  { %v62_v9 = vpop.xlane.xlu0 %61 }
  0xbc   :  { %v63_v10 = vrot.slane %v62_v9, 4 }
  0xbe   :  { %v64_v11 = vadd.f32 %v63_v10, %v62_v9 }
  0xc0   :  { %v65_v12 = vrot.slane %v64_v11, 2 }
  0xc2   :  { %v66_v13 = vadd.f32 %v65_v12, %v64_v11 }
  0xc4   :  { %v67_v14 = vrot.slane %v66_v13, 1 }
  0xc6   :  { %v68_v15 = vadd.f32 %v67_v14, %v66_v13 }
  0xc8   :  { %99 = vpush %v68_v15 }
  0xf9   :  { %s100_s1 = spop %99 }
  0xfa   :  { %s72_s6 = smul.f32 0.00048828125, %s100_s1 }
  0xfc   :  { %v73_v16 = vstv %s72_s6 }
  0xfd   :  { %108 = vrsqrt.f32 %v73_v16  ;;  %vm76_vm0 = vcmp.eq.f32.partialorder %v73_v16, inf  ;;  %v79_v19 = vand.u32 2147483648, %v73_v16  ;;  %vm78_vm1 = vcmp.eq.f32.partialorder %v73_v16, 0.0 }
 0x107   :  { %v109_v17 = vpop.eup %108 }
 0x108   :  { %v75_v18 = vmul.f32 %v109_v17, %v73_v16 }
 0x10a   :  { %v77_v20 = vsel %vm76_vm0, %v73_v16, %v75_v18 }
 0x10b   :  { %v80_v21 = vsel %vm78_vm1, %v79_v19, %v77_v20 }
 0x10c   :  { %101 = vpush %v80_v21 }
 0x13d   :  { %s102_s7 = spop %101 }
 0x13e   :  { %83 = sst [smem:[#allocation8]] %s102_s7 }
 0x13f   :  { %163 = shalt.err (!%p160_p4)
}
 0x140   :  { %s174_s15 = smov [#allocation8]  }
 0x141   :  { %91 = dma.smem_to_hbm %s174_s15, 16, %s228_s2, [#allocation5]  }
 0x142   :  { %168 = dma.done.wait [#allocation5], 16  }
 0x143   :  { %169 = vsyncadd [#allocation5], 4294967280 }
 0x144   :  { %95 = sfence }
 0x145   :  { %96 = vsyncpa [#allocation4], 1 }
 0x146   :  { %97 = vsyncpa [#allocation7], 1 }
 0x147   :  { %98 = vsyncpa [#allocation5], 1 }

</bundles_post_ra>
